<compile_context>
chip_gen: v7x
topology: tpu7x:2x2x1
jax: 0.10.0
libtpu: 0.0.40
codegen_flags: <defaults>
</compile_context>

<pallas_src>
import functools

import jax
import jax.numpy as jnp
from jax.experimental import pallas as pl
from jax.experimental.pallas import tpu as pltpu

# Double-buffered (input + output) working-set cap: safe on v7x's 64 MiB VMEM
# while still giving >512-wide blocks on realistic shapes.
_VMEM_WORKSET_BUDGET = 40 * 1024 * 1024
_VMEM_LIMIT_BYTES = 48 * 1024 * 1024  # above v5e(16)/v6e(32) scoped defaults, < v7x physical
_MAX_ROWS_PER_BLOCK = 4096


def _copy_kernel(x_ref, o_ref):
    # Input block already holds only the kept columns (lane-aligned W_out case).
    o_ref[...] = x_ref[...]


def _slice_kernel(x_ref, o_ref, *, w_out):
    # Input block holds full W rows; keep the leading w_out columns on-chip.
    o_ref[...] = x_ref[:, :w_out]


def _pick_block_rows(m, w_in_block, w_out, itemsize):
    """Largest row-block (multiple of 8, or the whole dim) within the VMEM budget."""
    r = _VMEM_WORKSET_BUDGET // (2 * (w_in_block + w_out) * itemsize)
    r = min(r, _MAX_ROWS_PER_BLOCK)
    if r >= m:
        return m  # block equals the full (second-to-last) dim -> always legal
    return max(8, (r // 8) * 8)


def chomp1d(x: jax.Array, chomp_size: int) -> jax.Array:
    """Equivalent of Chomp1d.forward: x[:, :, :, :-chomp_size]."""
    assert x.ndim == 4, "expected NCHW input"
    n, c, h, w = x.shape
    assert 0 < chomp_size < w
    w_out = w - chomp_size
    m = n * c * h
    itemsize = jnp.dtype(x.dtype).itemsize

    x2 = x.reshape(m, w)

    # If W_out is lane-aligned we can fetch only the kept columns; otherwise we
    # must read full rows (ragged W_out would violate the (8,128) block rule).
    lane_aligned = (w_out % 128 == 0)
    w_in_block = w_out if lane_aligned else w

    r = _pick_block_rows(m, w_in_block, w_out, itemsize)
    grid = (pl.cdiv(m, r),)

    if lane_aligned:
        kernel = _copy_kernel
    else:
        # TODO(synk): for very small ragged W_out (e.g. 13 here) the lane axis is
        # inherently sparse; a transpose to make rows the lane axis costs more
        # than the copy itself, so we accept masked partial stores on the output.
        kernel = functools.partial(_slice_kernel, w_out=w_out)

    in_spec = pl.BlockSpec((r, w_in_block), lambda i: (i, 0))
    out_spec = pl.BlockSpec((r, w_out), lambda i: (i, 0))

    bytes_accessed = m * (w_in_block + w_out) * itemsize

    out = pl.pallas_call(
        kernel,
        out_shape=jax.ShapeDtypeStruct((m, w_out), x.dtype),
        grid=grid,
        in_specs=[in_spec],
        out_specs=out_spec,
        compiler_params=pltpu.CompilerParams(
            dimension_semantics=("parallel",),
            vmem_limit_bytes=_VMEM_LIMIT_BYTES,
        ),
        cost_estimate=pl.CostEstimate(
            flops=0, transcendentals=0, bytes_accessed=bytes_accessed
        ),
    )(x2)

    return out.reshape(n, c, h, w_out)


if __name__ == "__main__":
    key = jax.random.PRNGKey(0)
    N, C, H, W = 2, 4, 16, 16
    chomp_size = 3

    x = jax.random.normal(key, (N, C, H, W), dtype=jnp.float32)

    y = chomp1d(x, chomp_size)
    jax.block_until_ready(y)

    # Reference check against plain JAX slicing (same semantics as torch).
    y_ref = x[:, :, :, :-chomp_size]
    assert y.shape == (N, C, H, W - chomp_size), y.shape
    assert jnp.array_equal(y, y_ref), "mismatch vs reference slice"

    # Second check with shapes where the row dim does not fit in one block path
    # differently (lane-aligned W_out branch).
    x2 = jax.random.normal(key, (2, 3, 8, 256 + 5), dtype=jnp.float32)
    y2 = chomp1d(x2, 5)
    assert jnp.array_equal(y2, x2[:, :, :, :-5]), "mismatch vs reference slice (aligned)"

    print("KERNEL_OK")
</pallas_src>

<mosaic_0001>
module attributes {stable_mosaic.version = 11 : i64} {
  func.func @_slice_kernel(%arg0: i32, %arg1: memref<128x16xf32, #tpu.memory_space<vmem>>, %arg2: memref<128x13xf32, #tpu.memory_space<vmem>>) attributes {dimension_semantics = [#tpu.dimension_semantics<parallel>], iteration_bounds = array<i64: 1>, scalar_prefetch = 0 : i64, scratch_operands = 0 : i64, tpu.core_type = #tpu.core_type<tc>, window_params = [{transform_indices = @transform_0, window_bounds = array<i64: 128, 16>}, {transform_indices = @transform_1, window_bounds = array<i64: 128, 13>}]} {
    %c0 = arith.constant 0 : index
    %c0_0 = arith.constant 0 : index
    %0 = vector.load %arg1[%c0, %c0_0] : memref<128x16xf32, #tpu.memory_space<vmem>>, vector<128x13xf32>
    %c0_1 = arith.constant 0 : index
    %c0_2 = arith.constant 0 : index
    %1 = vector.load %arg2[%c0_1, %c0_2] : memref<128x13xf32, #tpu.memory_space<vmem>>, vector<128x13xf32>
    tpu.vector_store %arg2[%c0_1, %c0_2], %0 {strides = array<i32>} : memref<128x13xf32, #tpu.memory_space<vmem>>, vector<128x13xf32>,
    return
  }
  func.func @transform_0(%arg0: i32) -> (i32, i32) {
    %c0_i32 = arith.constant 0 : i32
    %c0_i32_0 = arith.constant 0 : i32
    return %arg0, %c0_i32 : i32, i32
  }
  func.func @transform_1(%arg0: i32) -> (i32, i32) {
    %c0_i32 = arith.constant 0 : i32
    %c0_i32_0 = arith.constant 0 : i32
    return %arg0, %c0_i32 : i32, i32
  }
}

</mosaic_0001>

<bundles_post_ra>
// kernel: tpu_custom_call.1
= control target key start
LH: loop header
LB: loop body
LE: loop exit
PB: predicated region body
PF: predicated region fallthrough
CT: control target
= control target key end

     0   :  { %vm24_vm0 = vcmask 105472   ;;  %s167_s0 = inlined_call_operand.vmem [shape: f32[128,16], index: 0, kind: input, shape index: {}]   ;;  %s168_s1 = inlined_call_operand.vmem [shape: f32[128,13], index: 1, kind: output, shape index: {}]  }
   0x1   :  { %v8_v0 = vld [vmem:[%s167_s0] sm:$0xff]  ;;  %v9_v1 = vld [vmem:[%s167_s0 + $0x8] sm:$0xff]  ;;  %v10_v2 = vld [vmem:[%s167_s0 + $0x10] sm:$0xff] }
   0x2   :  { %25 = vst.msk [vmem:[%s168_s1] sm:$0xff] %vm24_vm0, %v8_v0  ;;  %26 = vst.msk [vmem:[%s168_s1 + $0x8] sm:$0xff] %vm24_vm0, %v9_v1  ;;  %v11_v3 = vld [vmem:[%s167_s0 + $0x18] sm:$0xff]  ;;  %v12_v4 = vld [vmem:[%s167_s0 + $0x20] sm:$0xff] }
   0x3   :  { %27 = vst.msk [vmem:[%s168_s1 + $0x10] sm:$0xff] %vm24_vm0, %v10_v2  ;;  %v13_v5 = vld [vmem:[%s167_s0 + $0x28] sm:$0xff]  ;;  %28 = vst.msk [vmem:[%s168_s1 + $0x18] sm:$0xff] %vm24_vm0, %v11_v3  ;;  %v14_v6 = vld [vmem:[%s167_s0 + $0x30] sm:$0xff] }
   0x4   :  { %29 = vst.msk [vmem:[%s168_s1 + $0x20] sm:$0xff] %vm24_vm0, %v12_v4  ;;  %30 = vst.msk [vmem:[%s168_s1 + $0x28] sm:$0xff] %vm24_vm0, %v13_v5  ;;  %v15_v7 = vld [vmem:[%s167_s0 + $0x38] sm:$0xff]  ;;  %v16_v8 = vld [vmem:[%s167_s0 + $0x40] sm:$0xff] }
   0x5   :  { %31 = vst.msk [vmem:[%s168_s1 + $0x30] sm:$0xff] %vm24_vm0, %v14_v6  ;;  %32 = vst.msk [vmem:[%s168_s1 + $0x38] sm:$0xff] %vm24_vm0, %v15_v7  ;;  %v17_v9 = vld [vmem:[%s167_s0 + $0x48] sm:$0xff]  ;;  %v18_v10 = vld [vmem:[%s167_s0 + $0x50] sm:$0xff] }
   0x6   :  { %33 = vst.msk [vmem:[%s168_s1 + $0x40] sm:$0xff] %vm24_vm0, %v16_v8  ;;  %v19_v11 = vld [vmem:[%s167_s0 + $0x58] sm:$0xff]  ;;  %34 = vst.msk [vmem:[%s168_s1 + $0x48] sm:$0xff] %vm24_vm0, %v17_v9  ;;  %v20_v12 = vld [vmem:[%s167_s0 + $0x60] sm:$0xff] }
   0x7   :  { %35 = vst.msk [vmem:[%s168_s1 + $0x50] sm:$0xff] %vm24_vm0, %v18_v10  ;;  %36 = vst.msk [vmem:[%s168_s1 + $0x58] sm:$0xff] %vm24_vm0, %v19_v11  ;;  %v21_v13 = vld [vmem:[%s167_s0 + $0x68] sm:$0xff]  ;;  %v22_v14 = vld [vmem:[%s167_s0 + $0x70] sm:$0xff] }
   0x8   :  { %37 = vst.msk [vmem:[%s168_s1 + $0x60] sm:$0xff] %vm24_vm0, %v20_v12  ;;  %38 = vst.msk [vmem:[%s168_s1 + $0x68] sm:$0xff] %vm24_vm0, %v21_v13  ;;  %v23_v15 = vld [vmem:[%s167_s0 + $0x78] sm:$0xff] }
   0x9   :  { %39 = vst.msk [vmem:[%s168_s1 + $0x70] sm:$0xff] %vm24_vm0, %v22_v14  ;;  %40 = vst.msk [vmem:[%s168_s1 + $0x78] sm:$0xff] %vm24_vm0, %v23_v15 }

</bundles_post_ra>
